<compile_context>
chip_gen: v5e
topology: v5e:2x2
jax: 0.10.0
libtpu: 0.0.40
codegen_flags: <defaults>
</compile_context>

<pallas_src>
import jax
import jax.numpy as jnp
from jax.experimental import pallas as pl
from jax.experimental.pallas import tpu as pltpu


def _round_up(n, m):
    return ((n + m - 1) // m) * m


def ppo_critic_kernel(x_ref, w1_ref, b1_ref, w2_ref, b2_ref, w3_ref, b3_ref, o_ref):
    x = x_ref[...]                                                  # [TILE_B, D_in] bf16

    # Layer 1: Linear (MXU, f32 accumulate) + bias + ReLU in f32.
    h1 = jnp.dot(x, w1_ref[...], preferred_element_type=jnp.float32) + b1_ref[...]
    h1 = jnp.maximum(h1, 0.0)

    # Layer 2: Linear + bias + ReLU (cast activation back to bf16 for the MXU).
    h2 = jnp.dot(h1.astype(w2_ref.dtype), w2_ref[...],
                 preferred_element_type=jnp.float32) + b2_ref[...]
    h2 = jnp.maximum(h2, 0.0)

    # Layer 3 (value head): replace the N=1 matmul with VPU multiply + XLU
    # lane reduction.  w3 is stored as a [1, hidden] row.
    w3_row = w3_ref[...].astype(jnp.float32)                        # [1, H]
    v = jnp.sum(h2 * w3_row, axis=-1, keepdims=True) + b3_ref[...]  # [TILE_B, 1]
    o_ref[...] = v.astype(o_ref.dtype)


def ppo_critic_forward(x, params, tile_b=1024):
    """x: [B, input_size] float32; params: dict of bf16 weights / f32 biases."""
    w1, b1 = params["w1"], params["b1"]
    w2, b2 = params["w2"], params["b2"]
    w3, b3 = params["w3"], params["b3"]

    B, D = x.shape

    # Batch tile: large by default, shrunk (and 8-aligned) for tiny batches.
    tb = min(tile_b, _round_up(B, 8))
    tb = _round_up(tb, 8)
    b_pad = _round_up(B, tb)
    if b_pad != B:
        x = jnp.pad(x, ((0, b_pad - B), (0, 0)))
    x = x.astype(jnp.bfloat16)

    grid = (b_pad // tb,)

    # Weights / biases: full blocks with constant index_map -> VMEM-resident
    # across all grid iterations (DMA'd once).
    def resident(a):
        return pl.BlockSpec(a.shape, lambda i: (0,) * a.ndim)

    out = pl.pallas_call(
        ppo_critic_kernel,
        out_shape=jax.ShapeDtypeStruct((b_pad, 1), jnp.float32),
        grid=grid,
        in_specs=[
            pl.BlockSpec((tb, D), lambda i: (i, 0)),   # x: tiled over batch
            resident(w1), resident(b1),
            resident(w2), resident(b2),
            resident(w3), resident(b3),
        ],
        out_specs=pl.BlockSpec((tb, 1), lambda i: (i, 0)),
        compiler_params=pltpu.CompilerParams(
            dimension_semantics=("parallel",),
            vmem_limit_bytes=32 * 1024 * 1024,
        ),
    )(x, w1, b1, w2, b2, w3, b3)

    return out[:B]


def init_params(key, input_size, hidden_size):
    """Init mimicking nn.Linear's uniform(-1/sqrt(fan_in), 1/sqrt(fan_in)).

    Weights are stored as [in, out] (transposed vs. PyTorch) in bf16 for x @ W;
    biases stay f32.  The head weight w3 is stored as a [1, hidden] row.
    """
    ks = jax.random.split(key, 6)

    def lin(kw, kb, fan_in, fan_out):
        bound = 1.0 / jnp.sqrt(fan_in)
        w = jax.random.uniform(kw, (fan_in, fan_out), jnp.float32, -bound, bound)
        b = jax.random.uniform(kb, (1, fan_out), jnp.float32, -bound, bound)
        return w.astype(jnp.bfloat16), b

    w1, b1 = lin(ks[0], ks[1], input_size, hidden_size)
    w2, b2 = lin(ks[2], ks[3], hidden_size, hidden_size)
    w3_col, b3 = lin(ks[4], ks[5], hidden_size, 1)
    w3 = w3_col.T          # [1, hidden] row for the VPU-reduce head
    b3 = b3                # [1, 1]
    return {"w1": w1, "b1": b1, "w2": w2, "b2": b2, "w3": w3, "b3": b3}


def reference_forward(x, p):
    """Precision-matched JAX reference (bf16 operands, f32 accumulate)."""
    xb = x.astype(jnp.bfloat16)
    h1 = jnp.maximum(
        jnp.dot(xb, p["w1"], preferred_element_type=jnp.float32) + p["b1"], 0.0)
    h2 = jnp.maximum(
        jnp.dot(h1.astype(jnp.bfloat16), p["w2"],
                preferred_element_type=jnp.float32) + p["b2"], 0.0)
    return jnp.sum(h2 * p["w3"].astype(jnp.float32), axis=-1, keepdims=True) + p["b3"]


if __name__ == "__main__":
    key = jax.random.PRNGKey(0)
    k_x, k_p = jax.random.split(key)

    input_size = 32
    hidden_size = 32
    params = init_params(k_p, input_size, hidden_size)

    # Case 1: batch not a multiple of the tile, small tile -> multi-step grid
    # (exercises padding, resident weights, and the batch pipeline).
    batch = 200
    x = jax.random.normal(k_x, (batch, input_size), jnp.float32)
    out = jax.block_until_ready(ppo_critic_forward(x, params, tile_b=64))
    ref = reference_forward(x, params)
    assert out.shape == (batch, 1), out.shape
    assert jnp.allclose(out, ref, atol=1e-3, rtol=1e-3), (out, ref)

    # Case 2: tiny batch, default (auto-shrunk) tile, single grid step.
    batch2 = 8
    x2 = jax.random.normal(jax.random.PRNGKey(1), (batch2, input_size), jnp.float32)
    out2 = jax.block_until_ready(ppo_critic_forward(x2, params))
    ref2 = reference_forward(x2, params)
    assert out2.shape == (batch2, 1), out2.shape
    assert jnp.allclose(out2, ref2, atol=1e-3, rtol=1e-3), (out2, ref2)

    print("KERNEL_OK")
</pallas_src>

<mosaic_0001>
module attributes {stable_mosaic.version = 11 : i64} {
  func.func @ppo_critic_kernel(%arg0: i32, %arg1: memref<64x32xbf16, #tpu.memory_space<vmem>>, %arg2: memref<32x32xbf16, #tpu.memory_space<vmem>>, %arg3: memref<1x32xf32, #tpu.memory_space<vmem>>, %arg4: memref<32x32xbf16, #tpu.memory_space<vmem>>, %arg5: memref<1x32xf32, #tpu.memory_space<vmem>>, %arg6: memref<1x32xbf16, #tpu.memory_space<vmem>>, %arg7: memref<1x1xf32, #tpu.memory_space<vmem>>, %arg8: memref<64x1xf32, #tpu.memory_space<vmem>>) attributes {dimension_semantics = [#tpu.dimension_semantics<parallel>], iteration_bounds = array<i64: 4>, scalar_prefetch = 0 : i64, scratch_operands = 0 : i64, tpu.core_type = #tpu.core_type<tc>, window_params = [{transform_indices = @transform_0, window_bounds = array<i64: 64, 32>}, {pipeline_mode = #tpu.pipeline_mode<synchronous>, transform_indices = @transform_1, window_bounds = array<i64: 32, 32>}, {pipeline_mode = #tpu.pipeline_mode<synchronous>, transform_indices = @transform_2, window_bounds = array<i64: 1, 32>}, {pipeline_mode = #tpu.pipeline_mode<synchronous>, transform_indices = @transform_3, window_bounds = array<i64: 32, 32>}, {pipeline_mode = #tpu.pipeline_mode<synchronous>, transform_indices = @transform_4, window_bounds = array<i64: 1, 32>}, {pipeline_mode = #tpu.pipeline_mode<synchronous>, transform_indices = @transform_5, window_bounds = array<i64: 1, 32>}, {pipeline_mode = #tpu.pipeline_mode<synchronous>, transform_indices = @transform_6, window_bounds = array<i64: 1, 1>}, {transform_indices = @transform_7, window_bounds = array<i64: 64, 1>}]} {
    %c0 = arith.constant 0 : index
    %c0_0 = arith.constant 0 : index
    %0 = vector.load %arg1[%c0, %c0_0] : memref<64x32xbf16, #tpu.memory_space<vmem>>, vector<64x32xbf16>
    %c0_1 = arith.constant 0 : index
    %c0_2 = arith.constant 0 : index
    %1 = vector.load %arg2[%c0_1, %c0_2] : memref<32x32xbf16, #tpu.memory_space<vmem>>, vector<32x32xbf16>
    %cst = arith.constant dense<0.000000e+00> : vector<64x32xf32>
    %2 = tpu.matmul %0, %1, %cst {dimension_numbers = #tpu.dot_dimension_numbers<[1], [0], [0], [1], [0, 0, 1, 1], [], []>} : vector<64x32xbf16>, vector<32x32xbf16>, vector<64x32xf32> -> vector<64x32xf32>
    %c0_3 = arith.constant 0 : index
    %c0_4 = arith.constant 0 : index
    %3 = vector.load %arg3[%c0_3, %c0_4] : memref<1x32xf32, #tpu.memory_space<vmem>>, vector<1x32xf32>
    %4 = vector.broadcast %3 : vector<1x32xf32> to vector<64x32xf32>
    %5 = arith.addf %2, %4 : vector<64x32xf32>
    %cst_5 = arith.constant 0.000000e+00 : f32
    %6 = vector.broadcast %cst_5 : f32 to vector<64x32xf32>
    %7 = arith.maximumf %5, %6 : vector<64x32xf32>
    %8 = arith.truncf %7 : vector<64x32xf32> to vector<64x32xbf16>
    %c0_6 = arith.constant 0 : index
    %c0_7 = arith.constant 0 : index
    %9 = vector.load %arg4[%c0_6, %c0_7] : memref<32x32xbf16, #tpu.memory_space<vmem>>, vector<32x32xbf16>
    %cst_8 = arith.constant dense<0.000000e+00> : vector<64x32xf32>
    %10 = tpu.matmul %8, %9, %cst_8 {dimension_numbers = #tpu.dot_dimension_numbers<[1], [0], [0], [1], [0, 0, 1, 1], [], []>} : vector<64x32xbf16>, vector<32x32xbf16>, vector<64x32xf32> -> vector<64x32xf32>
    %c0_9 = arith.constant 0 : index
    %c0_10 = arith.constant 0 : index
    %11 = vector.load %arg5[%c0_9, %c0_10] : memref<1x32xf32, #tpu.memory_space<vmem>>, vector<1x32xf32>
    %12 = vector.broadcast %11 : vector<1x32xf32> to vector<64x32xf32>
    %13 = arith.addf %10, %12 : vector<64x32xf32>
    %cst_11 = arith.constant 0.000000e+00 : f32
    %14 = vector.broadcast %cst_11 : f32 to vector<64x32xf32>
    %15 = arith.maximumf %13, %14 : vector<64x32xf32>
    %c0_12 = arith.constant 0 : index
    %c0_13 = arith.constant 0 : index
    %16 = vector.load %arg6[%c0_12, %c0_13] : memref<1x32xbf16, #tpu.memory_space<vmem>>, vector<1x32xbf16>
    %17 = arith.extf %16 : vector<1x32xbf16> to vector<1x32xf32>
    %18 = vector.broadcast %17 : vector<1x32xf32> to vector<64x32xf32>
    %19 = arith.mulf %15, %18 : vector<64x32xf32>
    %cst_14 = arith.constant dense<0.000000e+00> : vector<64xf32>
    %20 = vector.multi_reduction <add>, %19, %cst_14 [1] : vector<64x32xf32> to vector<64xf32>
    %21 = vector.shape_cast %20 : vector<64xf32> to vector<64x1xf32>
    %c0_15 = arith.constant 0 : index
    %c0_16 = arith.constant 0 : index
    %22 = vector.load %arg7[%c0_15, %c0_16] : memref<1x1xf32, #tpu.memory_space<vmem>>, vector<1x1xf32>
    %23 = vector.broadcast %22 : vector<1x1xf32> to vector<64x1xf32>
    %24 = arith.addf %21, %23 : vector<64x1xf32>
    %c0_17 = arith.constant 0 : index
    %c0_18 = arith.constant 0 : index
    %25 = vector.load %arg8[%c0_17, %c0_18] : memref<64x1xf32, #tpu.memory_space<vmem>>, vector<64x1xf32>
    tpu.vector_store %arg8[%c0_17, %c0_18], %24 {strides = array<i32>} : memref<64x1xf32, #tpu.memory_space<vmem>>, vector<64x1xf32>,
    return
  }
  func.func @transform_0(%arg0: i32) -> (i32, i32) {
    %c0_i32 = arith.constant 0 : i32
    %c0_i32_0 = arith.constant 0 : i32
    return %arg0, %c0_i32 : i32, i32
  }
  func.func @transform_1(%arg0: i32) -> (i32, i32) {
    %c0_i32 = arith.constant 0 : i32
    %c0_i32_0 = arith.constant 0 : i32
    %c0_i32_1 = arith.constant 0 : i32
    return %c0_i32, %c0_i32_0 : i32, i32
  }
  func.func @transform_2(%arg0: i32) -> (i32, i32) {
    %c0_i32 = arith.constant 0 : i32
    %c0_i32_0 = arith.constant 0 : i32
    %c0_i32_1 = arith.constant 0 : i32
    return %c0_i32, %c0_i32_0 : i32, i32
  }
  func.func @transform_3(%arg0: i32) -> (i32, i32) {
    %c0_i32 = arith.constant 0 : i32
    %c0_i32_0 = arith.constant 0 : i32
    %c0_i32_1 = arith.constant 0 : i32
    return %c0_i32, %c0_i32_0 : i32, i32
  }
  func.func @transform_4(%arg0: i32) -> (i32, i32) {
    %c0_i32 = arith.constant 0 : i32
    %c0_i32_0 = arith.constant 0 : i32
    %c0_i32_1 = arith.constant 0 : i32
    return %c0_i32, %c0_i32_0 : i32, i32
  }
  func.func @transform_5(%arg0: i32) -> (i32, i32) {
    %c0_i32 = arith.constant 0 : i32
    %c0_i32_0 = arith.constant 0 : i32
    %c0_i32_1 = arith.constant 0 : i32
    return %c0_i32, %c0_i32_0 : i32, i32
  }
  func.func @transform_6(%arg0: i32) -> (i32, i32) {
    %c0_i32 = arith.constant 0 : i32
    %c0_i32_0 = arith.constant 0 : i32
    %c0_i32_1 = arith.constant 0 : i32
    return %c0_i32, %c0_i32_0 : i32, i32
  }
  func.func @transform_7(%arg0: i32) -> (i32, i32) {
    %c0_i32 = arith.constant 0 : i32
    %c0_i32_0 = arith.constant 0 : i32
    return %arg0, %c0_i32 : i32, i32
  }
}

</mosaic_0001>

<bundles_post_ra>
// kernel: tpu_custom_call.1
= control target key start
LH: loop header
LB: loop body
LE: loop exit
PB: predicated region body
PF: predicated region fallthrough
CT: control target
= control target key end

     0   :  { %s693_s26 = smov 0   ;;  %s759_s0 = inlined_call_operand.vmem [shape: bf16[256,32], index: 0, kind: input, shape index: {}]   ;;  %s760_s1 = inlined_call_operand.vmem [shape: bf16[32,32], index: 1, kind: input, shape index: {}]   ;;  %s761_s2 = inlined_call_operand.vmem [shape: f32[1,32], index: 2, kind: input, shape index: {}]   ;;  %s762_s3 = inlined_call_operand.vmem [shape: bf16[32,32], index: 3, kind: input, shape index: {}]   ;;  %s763_s4 = inlined_call_operand.vmem [shape: f32[1,32], index: 4, kind: input, shape index: {}]   ;;  %s764_s5 = inlined_call_operand.vmem [shape: bf16[1,32], index: 5, kind: input, shape index: {}]   ;;  %s765_s6 = inlined_call_operand.<no memory space> [shape: f32[1,1], index: 6, kind: input, shape index: {}]   ;;  %s766_s7 = inlined_call_operand.vmem [shape: f32[256,1], index: 7, kind: output, shape index: {}]  }
   0x1   :  { %v12_v0 = vstv %s765_s6 }
   0x2   :  { %13 = vst [vmem:[#allocation2] sm:$0x1] %v12_v0 }
   0x3 LB: > { %s568_s27 = sadd.s32 4294967295, %s648_s26   ;;  %p572_p0 = scmp.ge.s32.totalorder %s648_s26, 1  ;;  %s648_s26 = sphi %s693_s26, %s19_s26  }
   0x4   : > { %p240_p1 = scmp.lt.s32.totalorder %s648_s26, 5 }
   0x6   : > { %p241_p2 = pnand %p572_p0, %p240_p1 }
   0x7   : > { %s573_s6 = sshll.u32 (!%p241_p2), %s568_s27, 3 }
   0x8   : > { %244 = sbr.rel (%p241_p2) target bundleno = 449 (0x1c1), region = 48  ;;  %p273_p3 = scmp.lt.s32.totalorder (!%p241_p2), %s573_s6, 31 }
   0xd   : > { %v624_v1 = vld [vmem:[%s760_s1 + $0x8] sm:$0xff]  ;;  %v623_v2 = vld [vmem:[%s760_s1] sm:$0xff]  ;;  %s768_s6 = smov (!%p273_p3, %s573_s6), 31  ;;  %vm333_vm0 = vcmask 261120   ;;  %vm503_vm1 = vcmask 7168  }
   0xe   : > { %352 = vmatpush.bf16.msra.mxu0 %v624_v1  ;;  %627 = vmatpush.bf16.msra.mxu2 %v624_v1  ;;  %s574_s9 = sshll.u32 %s768_s6, 2  ;;  %v626_v7 = vld [vmem:[%s762_s3 + $0x8] sm:$0xff]  ;;  %v625_v8 = vld [vmem:[%s762_s3] sm:$0xff]  ;;  %s576_s23 = sshll.u32 %s768_s6, 3 }
   0xf   : > { %s276_s12 = scalar_lea.vmem %s759_s0, %s574_s9  ;;  %425 = vmatpush.bf16.msra.mxu1 %v626_v7  ;;  %629 = vmatpush.bf16.msra.mxu3 %v626_v7  ;;  %v639_v10 = vld [vmem:[%s761_s2] ss:$0 sm:$0xff]  ;;  %s282_s27 = scalar_lea.vmem %s766_s7, %s576_s23 }
  0x10   : > { %v619_v3 = vld [vmem:[%s276_s12] sm:$0xff]  ;;  %v621_v4 = vld [vmem:[%s276_s12 + $0x10] sm:$0xff]  ;;  %v620_v5 = vld [vmem:[%s276_s12 + $0x8] sm:$0xff] }
  0x11   : > { %v622_v6 = vld [vmem:[%s276_s12 + $0x18] sm:$0xff]  ;;  %v456_v38 = vld [vmem:[%s764_s5] sm:$0x1] }
  0x12   : > { %353 = vmatpush.bf16.msra.mxu0 %v623_v2  ;;  %628 = vmatpush.bf16.msra.mxu2 %v623_v2  ;;  %v640_v39 = vld [vmem:[%s763_s4] ss:$0 sm:$0xff]  ;;  %v457_v40 = vunpack.c.l.bf16 %v456_v38 }
  0x13   : > { %426 = vmatpush.bf16.msra.mxu1 %v625_v8  ;;  %630 = vmatpush.bf16.msra.mxu3 %v625_v8 }
  0x14   : > { %v458_v43 = vperm.slane %v457_v40, 0 }
  0x15   : > { %601 = vmatmul.msk.bf16.vlgmr.msra.gmra.mxu0 %vm333_vm0, %v619_v3  ;;  %603 = vmatmul.msk.bf16.vlgmr.msra.gmra.mxu2 %vm333_vm0, %v621_v4 }
  0x25   : > { %602 = vmatmul.msk.bf16.gmra.mxu0 %vm333_vm0, %v620_v5  ;;  %604 = vmatmul.msk.bf16.gmra.mxu2 %vm333_vm0, %v622_v6 }
  0x92   : > { %v355_v9 = vpop.f32.mrf.mxu0 }
  0x93   : > { %v356_v12 = vadd.f32 %v639_v10, %v355_v9 }
  0x95   : > { %v375_v15 = vmax.f32 %v356_v12, 0.0 }
  0x98   : > { %v365_v11 = vpop.f32.mrf.mxu2 }
  0x99   : > { %v366_v17 = vadd.f32 %v639_v10, %v365_v11 }
  0x9a   : > { %v357_v13 = vpop.f32.mrf.mxu0 }
  0x9b   : > { %v358_v14 = vadd.f32 %v639_v10, %v357_v13  ;;  %v379_v22 = vmax.f32 %v366_v17, 0.0 }
  0x9d   : > { %v376_v16 = vmax.f32 %v358_v14, 0.0 }
  0x9f   : > { %v383_v18 = vpack.c.bf16 %v376_v16, %v375_v15 }
  0xa0   : > { %v367_v19 = vpop.f32.mrf.mxu2 }
  0xa1   : > { %v368_v20 = vadd.f32 %v639_v10, %v367_v19  ;;  %613 = vmatmul.msk.bf16.vlgmr.msra.gmra.mxu1 %vm333_vm0, %v383_v18  ;;  %v641_v18 = vld [vmem:[#allocation2] ss:$0 sm:$0xff] }
  0xa2   : > { %v360_v21 = vpop.f32.mrf.mxu0 }
  0xa3   : > { %v380_v23 = vmax.f32 %v368_v20, 0.0  ;;  %v361_v26 = vadd.f32 %v639_v10, %v360_v21 }
  0xa5   : > { %v385_v24 = vpack.c.bf16 %v380_v23, %v379_v22  ;;  %v377_v29 = vmax.f32 %v361_v26, 0.0 }
  0xa7   : > { %615 = vmatmul.msk.bf16.vlgmr.msra.gmra.mxu3 %vm333_vm0, %v385_v24 }
  0xa8   : > { %v370_v25 = vpop.f32.mrf.mxu2 }
  0xa9   : > { %v371_v31 = vadd.f32 %v639_v10, %v370_v25 }
  0xaa   : > { %v362_v27 = vpop.f32.mrf.mxu0 }
  0xab   : > { %v363_v28 = vadd.f32 %v639_v10, %v362_v27  ;;  %v381_v35 = vmax.f32 %v371_v31, 0.0 }
  0xad   : > { %v378_v30 = vmax.f32 %v363_v28, 0.0 }
  0xaf   : > { %v384_v32 = vpack.c.bf16 %v378_v30, %v377_v29 }
  0xb0   : > { %v372_v33 = vpop.f32.mrf.mxu2 }
  0xb1   : > { %v373_v34 = vadd.f32 %v639_v10, %v372_v33  ;;  %614 = vmatmul.msk.bf16.gmra.mxu1 %vm333_vm0, %v384_v32 }
  0xb3   : > { %v382_v36 = vmax.f32 %v373_v34, 0.0 }
  0xb5   : > { %v386_v37 = vpack.c.bf16 %v382_v36, %v381_v35 }
  0xb7   : > { %616 = vmatmul.msk.bf16.gmra.mxu3 %vm333_vm0, %v386_v37 }
 0x11e   : > { %v428_v41 = vpop.f32.mrf.mxu1 }
 0x11f   : > { %v429_v42 = vadd.f32 %v640_v39, %v428_v41 }
 0x121   : > { %v448_v44 = vmax.f32 %v429_v42, 0.0 }
 0x123   : > { %v459_v45 = vmul.f32 %v458_v43, %v448_v44 }
 0x125   : > { %v467_v46 = vsel %vm333_vm0, %v459_v45, 0.0 }
 0x126   : > { %v430_v47 = vpop.f32.mrf.mxu1  ;;  %468 = vadd.xlane.f32.xlu0 %v467_v46 }
 0x127   : > { %v431_v48 = vadd.f32 %v640_v39, %v430_v47 }
 0x129   : > { %v449_v49 = vmax.f32 %v431_v48, 0.0 }
 0x12a   : > { %v438_v50 = vpop.f32.mrf.mxu3 }
 0x12b   : > { %v439_v51 = vadd.f32 %v640_v39, %v438_v50  ;;  %v460_v52 = vmul.f32 %v458_v43, %v449_v49 }
 0x12d   : > { %v452_v53 = vmax.f32 %v439_v51, 0.0  ;;  %v470_v54 = vsel %vm333_vm0, %v460_v52, 0.0 }
 0x12e   : > { %v433_v55 = vpop.f32.mrf.mxu1  ;;  %471 = vadd.xlane.f32.xlu0 %v470_v54 }
 0x12f   : > { %v434_v56 = vadd.f32 %v640_v39, %v433_v55  ;;  %v463_v57 = vmul.f32 %v458_v43, %v452_v53 }
 0x131   : > { %v450_v58 = vmax.f32 %v434_v56, 0.0  ;;  %v479_v59 = vsel %vm333_vm0, %v463_v57, 0.0 }
 0x132   : > { %v440_v60 = vpop.f32.mrf.mxu3  ;;  %480 = vadd.xlane.f32.xlu2 %v479_v59 }
 0x133   : > { %v441_v61 = vadd.f32 %v640_v39, %v440_v60  ;;  %v461_v62 = vmul.f32 %v458_v43, %v450_v58 }
 0x135   : > { %v453_v63 = vmax.f32 %v441_v61, 0.0  ;;  %v473_v0 = vsel %vm333_vm0, %v461_v62, 0.0 }
 0x136   : > { %v435_v1 = vpop.f32.mrf.mxu1  ;;  %474 = vadd.xlane.f32.xlu1 %v473_v0 }
 0x137   : > { %v436_v2 = vadd.f32 %v640_v39, %v435_v1  ;;  %v464_v3 = vmul.f32 %v458_v43, %v453_v63 }
 0x139   : > { %v451_v4 = vmax.f32 %v436_v2, 0.0  ;;  %v482_v5 = vsel %vm333_vm0, %v464_v3, 0.0 }
 0x13a   : > { %v443_v6 = vpop.f32.mrf.mxu3  ;;  %483 = vadd.xlane.f32.xlu2 %v482_v5 }
 0x13b   : > { %v444_v7 = vadd.f32 %v640_v39, %v443_v6  ;;  %v462_v8 = vmul.f32 %v458_v43, %v451_v4 }
 0x13d   : > { %v454_v9 = vmax.f32 %v444_v7, 0.0  ;;  %v476_v10 = vsel %vm333_vm0, %v462_v8, 0.0 }
 0x13e   : > { %477 = vadd.xlane.f32.xlu1 %v476_v10 }
 0x13f   : > { %v465_v11 = vmul.f32 %v458_v43, %v454_v9 }
 0x141   : > { %v485_v12 = vsel %vm333_vm0, %v465_v11, 0.0 }
 0x142   : > { %v445_v13 = vpop.f32.mrf.mxu3  ;;  %486 = vadd.xlane.f32.xlu0 %v485_v12 }
 0x143   : > { %v446_v14 = vadd.f32 %v640_v39, %v445_v13 }
 0x145   : > { %v455_v15 = vmax.f32 %v446_v14, 0.0 }
 0x147   : > { %v466_v16 = vmul.f32 %v458_v43, %v455_v15 }
 0x149   : > { %v488_v17 = vsel %vm333_vm0, %v466_v16, 0.0 }
 0x14a   : > { %489 = vadd.xlane.f32.xlu1 %v488_v17 }
 0x199   : > { %v469_v19 = vpop.xlane.xlu0 %468 }
 0x19a   : > { %v495_v20 = vadd.f32 %v641_v18, %v469_v19 }
 0x19c   : > { %504 = vst.msk [vmem:[%s282_s27] sm:$0xff] %vm503_vm1, %v495_v20 }
 0x1a1   : > { %v472_v21 = vpop.xlane.xlu0 %471 }
 0x1a2   : > { %v496_v22 = vadd.f32 %v641_v18, %v472_v21 }
 0x1a4   : > { %505 = vst.msk [vmem:[%s282_s27 + $0x8] sm:$0xff] %vm503_vm1, %v496_v22 }
 0x1a5   : > { %v481_v23 = vpop.xlane.xlu2 %480 }
 0x1a6   : > { %v499_v24 = vadd.f32 %v641_v18, %v481_v23 }
 0x1a8   : > { %508 = vst.msk [vmem:[%s282_s27 + $0x20] sm:$0xff] %vm503_vm1, %v499_v24 }
 0x1a9   : > { %v475_v25 = vpop.xlane.xlu1 %474 }
 0x1aa   : > { %v497_v26 = vadd.f32 %v641_v18, %v475_v25 }
 0x1ac   : > { %506 = vst.msk [vmem:[%s282_s27 + $0x10] sm:$0xff] %vm503_vm1, %v497_v26 }
 0x1ad   : > { %v484_v27 = vpop.xlane.xlu2 %483 }
 0x1ae   : > { %v500_v28 = vadd.f32 %v641_v18, %v484_v27 }
 0x1b0   : > { %509 = vst.msk [vmem:[%s282_s27 + $0x28] sm:$0xff] %vm503_vm1, %v500_v28 }
 0x1b1   : > { %v478_v29 = vpop.xlane.xlu1 %477 }
 0x1b2   : > { %v498_v30 = vadd.f32 %v641_v18, %v478_v29 }
 0x1b4   : > { %507 = vst.msk [vmem:[%s282_s27 + $0x18] sm:$0xff] %vm503_vm1, %v498_v30 }
 0x1b5   : > { %v487_v31 = vpop.xlane.xlu0 %486 }
 0x1b6   : > { %v501_v32 = vadd.f32 %v641_v18, %v487_v31 }
 0x1b8   : > { %510 = vst.msk [vmem:[%s282_s27 + $0x30] sm:$0xff] %vm503_vm1, %v501_v32 }
 0x1bd   : > { %v490_v33 = vpop.xlane.xlu1 %489 }
 0x1be   : > { %v502_v34 = vadd.f32 %v641_v18, %v490_v33 }
 0x1c0   : > { %511 = vst.msk [vmem:[%s282_s27 + $0x38] sm:$0xff] %vm503_vm1, %v502_v34 }
 0x1c1 PF: > { %s19_s26 = sadd.s32 1, %s648_s26  }
 0x1c2   : > { %p16_p4 = scmp.ge.s32.totalorder %s19_s26, 6  }
 0x1c4   :  { %18 = sbr.rel (!%p16_p4) target bundleno = 3 (0x3), region = 78 }

</bundles_post_ra>
